<compile_context>
chip_gen: v7x
topology: tpu7x:2x2x1
jax: 0.10.0
libtpu: 0.0.40
codegen_flags: <defaults>
</compile_context>

<pallas_src>
import jax
import jax.numpy as jnp
from jax.experimental import pallas as pl
from jax.experimental.pallas import tpu as pltpu

INPUT_SIZE = 1
HIDDEN = 10
OUT_SIZE = 1

# Packed parameter layout: one (HIDDEN, 2*HIDDEN + 4) f32 array.
C_W2 = 0                   # [:, 0:H]         W2   (H, H)  (out, in) -- lane-aligned MXU operand
C_W3 = HIDDEN              # [0, H:2H]        W3   (1, H)  stored as a row
C_W1 = 2 * HIDDEN          # [:, 2H]          W1   (H, 1)
C_B1 = 2 * HIDDEN + 1      # [:, 2H+1]        b1   (H, 1)
C_B2 = 2 * HIDDEN + 2      # [:, 2H+2]        b2   (H, 1)
C_B3 = 2 * HIDDEN + 3      # [0, 2H+3]        b3   scalar
PACK_COLS = 2 * HIDDEN + 4

# Max lanes per grid step. Per-step VMEM footprint is roughly ~260 B/lane
# (double-buffered in/out blocks + (H, bt) f32 intermediates), so 64K lanes is
# ~17 MB -- comfortably inside v7x's 64 MiB VMEM with the explicit limit below.
_MAX_TILE = 64 * 1024
_VMEM_LIMIT_BYTES = 48 << 20  # < 64 MiB physical on v7x; trivially fine on v5e/v6e


def mlp_kernel(x_ref, p_ref, o_ref):
    # x_ref: (1, Bt) f32 -- batch on lanes (lane-dense loads/stores).
    x = x_ref[...]
    bt = x.shape[-1]
    hp = jax.lax.Precision.HIGHEST

    # Packed params (single small VMEM-resident block, W2 at lane offset 0).
    w2 = p_ref[:, C_W2:C_W2 + HIDDEN]        # (H, H)
    w3 = p_ref[0:1, C_W3:C_W3 + HIDDEN]      # (1, H)
    w1 = p_ref[:, C_W1:C_W1 + 1]             # (H, 1)
    b1 = p_ref[:, C_B1:C_B1 + 1]             # (H, 1)
    b2 = p_ref[:, C_B2:C_B2 + 1]             # (H, 1)
    b3 = p_ref[0:1, C_B3:C_B3 + 1]           # (1, 1)

    # Layer 1 (K=1): one hoisted sublane broadcast of x, then pure VPU FMA + ReLU.
    xb = jnp.broadcast_to(x, (HIDDEN, bt))   # (H, Bt)
    h = jnp.maximum(w1 * xb + b1, 0.0)       # (H, Bt)

    # Layer 2 (10x10): MXU matmul, batch stays lane-dense.
    h = jnp.dot(w2, h, preferred_element_type=jnp.float32, precision=hp) + b2
    h = jnp.maximum(h, 0.0)                  # (H, Bt)

    # Layer 3 (N=1): vector-matrix product on the (otherwise idle) MXU.
    y = jnp.dot(w3, h, preferred_element_type=jnp.float32, precision=hp) + b3  # (1, Bt)

    o_ref[...] = y                           # single lane-dense f32 store


def _choose_batch_tile(B):
    """One step for small/medium B; large B -> lane-aligned tiles, even step count."""
    if B <= _MAX_TILE:
        return B
    n_steps = pl.cdiv(B, _MAX_TILE)
    if n_steps % 2:
        n_steps += 1                 # even #steps balances v7x's two TensorCores
    bt = -(-B // n_steps)            # ceil
    return ((bt + 127) // 128) * 128  # lane-align


def mlp_forward(x, packed, *, batch_tile=None):
    """x: (B, INPUT_SIZE) f32. packed: (HIDDEN, PACK_COLS) f32. Returns (B, OUT_SIZE) f32."""
    B = x.shape[0]
    bt = _choose_batch_tile(B) if batch_tile is None else min(batch_tile, B)
    n_steps = pl.cdiv(B, bt)
    if n_steps > 1:
        assert bt % 128 == 0, "multi-step tiles must be lane-aligned (multiple of 128)"
    B_pad = n_steps * bt

    # (B,1) -> (1,B): contiguous, layout no-op (no transpose copy under jit).
    x_t = jnp.reshape(x, (1, B))
    if B_pad != B:
        x_t = jnp.pad(x_t, ((0, 0), (0, B_pad - B)))

    out_t = pl.pallas_call(
        mlp_kernel,
        out_shape=jax.ShapeDtypeStruct((OUT_SIZE, B_pad), jnp.float32),
        grid_spec=pltpu.PrefetchScalarGridSpec(
            num_scalar_prefetch=0,
            grid=(n_steps,),
            in_specs=[
                pl.BlockSpec((INPUT_SIZE, bt), lambda i: (0, i)),
                pl.BlockSpec(packed.shape, lambda i: (0, 0)),  # resident every step
            ],
            out_specs=pl.BlockSpec((OUT_SIZE, bt), lambda i: (0, i)),
        ),
        compiler_params=pltpu.CompilerParams(
            dimension_semantics=("parallel",),
            vmem_limit_bytes=_VMEM_LIMIT_BYTES,
        ),
    )(x_t, packed)

    return jnp.reshape(out_t[:, :B], (B, OUT_SIZE))


def init_params(key):
    """Torch-default-style init (uniform +/- 1/sqrt(fan_in)); weights in (out, in) layout."""
    ks = jax.random.split(key, 6)

    def linear(kw, kb, fan_in, fan_out):
        bound = 1.0 / jnp.sqrt(fan_in)
        w = jax.random.uniform(kw, (fan_out, fan_in), jnp.float32, -bound, bound)
        b = jax.random.uniform(kb, (fan_out,), jnp.float32, -bound, bound)
        return w, b

    w1, b1 = linear(ks[0], ks[1], INPUT_SIZE, HIDDEN)
    w2, b2 = linear(ks[2], ks[3], HIDDEN, HIDDEN)
    w3, b3 = linear(ks[4], ks[5], HIDDEN, OUT_SIZE)
    return {"w1": w1, "b1": b1, "w2": w2, "b2": b2, "w3": w3, "b3": b3}


def pack_params(p):
    packed = jnp.zeros((HIDDEN, PACK_COLS), jnp.float32)
    packed = packed.at[:, C_W2:C_W2 + HIDDEN].set(p["w2"])       # (H, H) at lane 0
    packed = packed.at[0, C_W3:C_W3 + HIDDEN].set(p["w3"][0])    # W3 as a (1, H) row
    packed = packed.at[:, C_W1].set(p["w1"][:, 0])               # (H,)
    packed = packed.at[:, C_B1].set(p["b1"])                     # (H,)
    packed = packed.at[:, C_B2].set(p["b2"])                     # (H,)
    packed = packed.at[0, C_B3].set(p["b3"][0])                  # scalar
    return packed


def mlp_reference(x, p):
    hp = jax.lax.Precision.HIGHEST
    h = jnp.maximum(jnp.dot(x, p["w1"].T, precision=hp) + p["b1"], 0.0)
    h = jnp.maximum(jnp.dot(h, p["w2"].T, precision=hp) + p["b2"], 0.0)
    return jnp.dot(h, p["w3"].T, precision=hp) + p["b3"]


if __name__ == "__main__":
    key = jax.random.PRNGKey(0)
    k_params, k_x = jax.random.split(key)
    params = init_params(k_params)
    packed = pack_params(params)

    B = 256
    x = jax.random.normal(k_x, (B, INPUT_SIZE), jnp.float32)
    ref = mlp_reference(x, params)

    # Default tiling: single grid step (best for small/medium batches on v5e/v6e).
    out = jax.block_until_ready(mlp_forward(x, packed))
    assert out.shape == (B, OUT_SIZE)
    assert jnp.allclose(out, ref, atol=1e-4, rtol=1e-4), "mismatch vs JAX reference (1-step)"

    # Also exercise the multi-step parallel grid path (2 lane-aligned tiles,
    # the megacore-friendly configuration on v7x).
    out2 = jax.block_until_ready(mlp_forward(x, packed, batch_tile=128))
    assert jnp.allclose(out2, ref, atol=1e-4, rtol=1e-4), "mismatch vs JAX reference (2-step)"

    print("KERNEL_OK")
</pallas_src>

<mosaic_0001>
module attributes {stable_mosaic.version = 11 : i64} {
  func.func @mlp_kernel(%arg0: i32, %arg1: memref<1x256xf32, #tpu.memory_space<vmem>>, %arg2: memref<10x24xf32, #tpu.memory_space<vmem>>, %arg3: memref<1x256xf32, #tpu.memory_space<vmem>>) attributes {dimension_semantics = [#tpu.dimension_semantics<parallel>], iteration_bounds = array<i64: 1>, scalar_prefetch = 0 : i64, scratch_operands = 0 : i64, tpu.core_type = #tpu.core_type<tc>, window_params = [{transform_indices = @transform_0, window_bounds = array<i64: 1, 256>}, {pipeline_mode = #tpu.pipeline_mode<synchronous>, transform_indices = @transform_1, window_bounds = array<i64: 10, 24>}, {transform_indices = @transform_2, window_bounds = array<i64: 1, 256>}]} {
    %c0 = arith.constant 0 : index
    %c0_0 = arith.constant 0 : index
    %0 = vector.load %arg1[%c0, %c0_0] : memref<1x256xf32, #tpu.memory_space<vmem>>, vector<1x256xf32>
    %c0_1 = arith.constant 0 : index
    %c0_2 = arith.constant 0 : index
    %1 = vector.load %arg2[%c0_1, %c0_2] : memref<10x24xf32, #tpu.memory_space<vmem>>, vector<10x10xf32>
    %c0_3 = arith.constant 0 : index
    %c10 = arith.constant 10 : index
    %2 = vector.load %arg2[%c0_3, %c10] : memref<10x24xf32, #tpu.memory_space<vmem>>, vector<1x10xf32>
    %c0_4 = arith.constant 0 : index
    %c20 = arith.constant 20 : index
    %3 = vector.load %arg2[%c0_4, %c20] : memref<10x24xf32, #tpu.memory_space<vmem>>, vector<10x1xf32>
    %c0_5 = arith.constant 0 : index
    %c21 = arith.constant 21 : index
    %4 = vector.load %arg2[%c0_5, %c21] : memref<10x24xf32, #tpu.memory_space<vmem>>, vector<10x1xf32>
    %c0_6 = arith.constant 0 : index
    %c22 = arith.constant 22 : index
    %5 = vector.load %arg2[%c0_6, %c22] : memref<10x24xf32, #tpu.memory_space<vmem>>, vector<10x1xf32>
    %c0_7 = arith.constant 0 : index
    %c23 = arith.constant 23 : index
    %6 = vector.load %arg2[%c0_7, %c23] : memref<10x24xf32, #tpu.memory_space<vmem>>, vector<1x1xf32>
    %7 = vector.shape_cast %0 : vector<1x256xf32> to vector<1x256xf32>
    %8 = vector.broadcast %7 : vector<1x256xf32> to vector<10x256xf32>
    %9 = vector.broadcast %3 : vector<10x1xf32> to vector<10x256xf32>
    %10 = arith.mulf %9, %8 : vector<10x256xf32>
    %11 = vector.broadcast %4 : vector<10x1xf32> to vector<10x256xf32>
    %12 = arith.addf %10, %11 : vector<10x256xf32>
    %cst = arith.constant 0.000000e+00 : f32
    %13 = vector.broadcast %cst : f32 to vector<10x256xf32>
    %14 = arith.maximumf %12, %13 : vector<10x256xf32>
    %cst_8 = arith.constant dense<0.000000e+00> : vector<10x256xf32>
    %15 = tpu.matmul %1, %14, %cst_8 {dimension_numbers = #tpu.dot_dimension_numbers<[1], [0], [0], [1], [0, 0, 1, 1], [], []>, precision = #tpu.contract_precision<fp32>} : vector<10x10xf32>, vector<10x256xf32>, vector<10x256xf32> -> vector<10x256xf32>
    %16 = vector.broadcast %5 : vector<10x1xf32> to vector<10x256xf32>
    %17 = arith.addf %15, %16 : vector<10x256xf32>
    %cst_9 = arith.constant 0.000000e+00 : f32
    %18 = vector.broadcast %cst_9 : f32 to vector<10x256xf32>
    %19 = arith.maximumf %17, %18 : vector<10x256xf32>
    %cst_10 = arith.constant dense<0.000000e+00> : vector<1x256xf32>
    %20 = tpu.matmul %2, %19, %cst_10 {dimension_numbers = #tpu.dot_dimension_numbers<[1], [0], [0], [1], [0, 0, 1, 1], [], []>, precision = #tpu.contract_precision<fp32>} : vector<1x10xf32>, vector<10x256xf32>, vector<1x256xf32> -> vector<1x256xf32>
    %21 = vector.broadcast %6 : vector<1x1xf32> to vector<1x256xf32>
    %22 = arith.addf %20, %21 : vector<1x256xf32>
    %c0_11 = arith.constant 0 : index
    %c0_12 = arith.constant 0 : index
    %23 = vector.load %arg3[%c0_11, %c0_12] : memref<1x256xf32, #tpu.memory_space<vmem>>, vector<1x256xf32>
    tpu.vector_store %arg3[%c0_11, %c0_12], %22 {strides = array<i32>} : memref<1x256xf32, #tpu.memory_space<vmem>>, vector<1x256xf32>,
    return
  }
  func.func @transform_0(%arg0: i32) -> (i32, i32) {
    %c0_i32 = arith.constant 0 : i32
    %c0_i32_0 = arith.constant 0 : i32
    return %c0_i32, %arg0 : i32, i32
  }
  func.func @transform_1(%arg0: i32) -> (i32, i32) {
    %c0_i32 = arith.constant 0 : i32
    %c0_i32_0 = arith.constant 0 : i32
    %c0_i32_1 = arith.constant 0 : i32
    return %c0_i32, %c0_i32_0 : i32, i32
  }
  func.func @transform_2(%arg0: i32) -> (i32, i32) {
    %c0_i32 = arith.constant 0 : i32
    %c0_i32_0 = arith.constant 0 : i32
    return %c0_i32, %arg0 : i32, i32
  }
}

</mosaic_0001>

<bundles_post_ra>
// kernel: tpu_custom_call.1
= control target key start
LH: loop header
LB: loop body
LE: loop exit
PB: predicated region body
PF: predicated region fallthrough
CT: control target
= control target key end

     0   :  { %7 = vsyncpa [#allocation3], 0  ;;  %s1500_s0 = inlined_call_operand.hbm [shape: f32[1,256], index: 0, kind: input, shape index: {}]   ;;  %s1501_s1 = inlined_call_operand.hbm [shape: f32[10,24], index: 1, kind: input, shape index: {}]   ;;  %s1502_s2 = inlined_call_operand.hbm [shape: f32[1,256], index: 2, kind: output, shape index: {}]  }
   0x1   :  { %8 = vsyncpa [#allocation6], 0 }
   0x2   :  { %9 = vsyncpa [#allocation4], 0  ;;  %s1367_s9 = smov [#allocation2]   ;;  %s1368_s11 = smov [#allocation5]  }
   0x3   :  { %s16_s10 = sshll.u32 %s1367_s9, 4  ;;  %s25_s12 = sshll.u32 %s1368_s11, 4  ;;  %s17_s10 = int_to_ptr.vmem [resolvable:$true] %s16_s10  ;;  %s1394_s12 = int_to_ptr.vmem [resolvable:$true] %s25_s12 }
   0x4   :  { %s1295_s15 = scalar_lea.hbm %s1500_s0, 32 }
   0x5   :  { %p1296_p0 = scmp.ne.s32.totalorder %s1500_s0, %s1295_s15  ;;  %p1299_p1 = scmp.lt.u32.totalorder %s1295_s15, %s1500_s0 }
   0x7   :  { %p1301_p2 = pnand %p1299_p1, %p1296_p0 }
   0x9   :  { %1304 = shalt.err (!%p1301_p2)
}
   0xa   :  { %s1305_s20 = scalar_lea.vmem %s17_s10, 32  ;;  %p1310_p4 = scmp.lt.s32.totalorder %s17_s10, %s17_s10 }
   0xb   :  { %p1306_p3 = scmp.ne.s32.totalorder %s17_s10, %s1305_s20  ;;  %p1311_p5 = scmp.lt.s32.totalorder %s1305_s20, %s1305_s20 }
   0xd   :  { %p1312_p6 = por %p1311_p5, %p1310_p4 }
   0xf   :  { %p1313_p7 = pnand %p1312_p6, %p1306_p3 }
  0x11   :  { %1316 = shalt.err (!%p1313_p7)
}
  0x12   :  { %19 = dma.hbm_to_vmem [thread:$0]  %s1500_s0, 32, %s17_s10, [#allocation3]  }
  0x13   :  { %s1317_s25 = scalar_lea.hbm %s1501_s1, 256 }
  0x14   :  { %p1318_p8 = scmp.ne.s32.totalorder %s1501_s1, %s1317_s25  ;;  %p1321_p9 = scmp.lt.u32.totalorder %s1317_s25, %s1501_s1 }
  0x16   :  { %p1323_p10 = pnand %p1321_p9, %p1318_p8 }
  0x18   :  { %1326 = shalt.err (!%p1323_p10)
}
  0x19   :  { %s1327_s30 = scalar_lea.vmem %s1394_s12, 256  ;;  %p1332_p12 = scmp.lt.s32.totalorder %s1394_s12, %s1394_s12 }
  0x1a   :  { %p1328_p11 = scmp.ne.s32.totalorder %s1394_s12, %s1327_s30  ;;  %p1333_p13 = scmp.lt.s32.totalorder %s1327_s30, %s1327_s30 }
  0x1c   :  { %p1334_p0 = por %p1333_p13, %p1332_p12 }
  0x1e   :  { %p1335_p1 = pnand %p1334_p0, %p1328_p11 }
  0x20   :  { %1338 = shalt.err (!%p1335_p1)
}
  0x21   :  { %s1369_s0 = smov 128   ;;  %s1370_s3 = smov 8  }
  0x22   :  { %31 = dma.hbm_to_vmem [thread:$0]  %s1501_s1, 256, %s1394_s12, [#allocation6], %s1369_s0, %s1369_s0, %s1370_s3  }
  0x23   :  { %1361 = dma.done.wait [#allocation3], 32  }
  0x24   :  { %1362 = vsyncadd [#allocation3], 4294967264 }
  0x25   :  { %1363 = dma.done.wait [#allocation6], 256  }
  0x26   :  { %1364 = vsyncadd [#allocation6], 4294967040  ;;  %v1371_v0 = vmov 21   ;;  %v1372_v1 = vmov 20   ;;  %v40_v2 = vld [vmem:[#allocation5 + $0x8] sm:$0x3]  ;;  %v43_v7 = vlaneseq }
  0x27   :  { %1291 = vset.pattern.permute.xlu1 %v1371_v0  ;;  %1290 = vset.pattern.permute.xlu0 %v1372_v1  ;;  %v39_v3 = vld [vmem:[#allocation5] sm:$0xff]  ;;  %v1373_v4 = vmov 0.0   ;;  %v1374_v5 = vmov 22   ;;  %s1375_s1 = smov 118   ;;  %vm91_vm0 = vcmask 80896   ;;  %vm96_vm1 = vcmask 1041408  }
  0x28   :  { %72 = vperm.xlu1 %1291, %v40_v2   ;;  %60 = vperm.xlu0 %1290, %v40_v2   ;;  %v1427_v6 = vld [vmem:[#allocation5] sm:$0x1]  ;;  %v1431_v8 = vshrl.u32 %v43_v7, 7  ;;  %v38_v11 = vld [vmem:[#allocation2] sm:$0x3]  ;;  %v92_v12 = vsel %vm91_vm0, %v39_v3, 0 }
  0x29   :  { %171 = vmatprep.mubr.f32.mxu1 %v1373_v4  ;;  %278 = vmatprep.mubr.f32.mxu0 %v1373_v4  ;;  %v1436_v15 = vand.u32 4294901760, %v92_v12  ;;  %v94_v20 = vsel %vm91_vm0, %v40_v2, 0  ;;  %s1378_s6 = smov [#allocation7]   ;;  %vm1173_vm2 = vcmp.lt.s32.totalorder %v43_v7, 256 }
  0x2a   :  { %v45_v9 = vsub.s32 0, %v1431_v8  ;;  %v49_v10 = vsub.s32 1, %v1431_v8  ;;  %v1442_v25 = vand.u32 4294901760, %v94_v20  ;;  %s1182_s7 = sshll.u32 %s1378_s6, 4  ;;  %s1183_s7 = int_to_ptr.vmem [resolvable:$true] %s1182_s7 }
  0x2b   :  { %v1440_v21 = vsub.f32 %v92_v12, %v1436_v15  ;;  %v1376_v12 = vmov 23   ;;  %s1339_s8 = scalar_lea.vmem %s1183_s7, 32  ;;  %p1344_p3 = scmp.lt.s32.totalorder %s1183_s7, %s1183_s7 }
  0x2c   :  { %68 = vperm.xlu1 %1291, %v39_v3   ;;  %55 = vperm.xlu0 %1290, %v39_v3   ;;  %v46_v13 = vrot.slane %v38_v11, %v45_v9  ;;  %v50_v14 = vrot.slane %v38_v11, %v49_v10  ;;  %v184_v38 = vsub.f32 %v94_v20, %v1442_v25  ;;  %p1340_p2 = scmp.ne.s32.totalorder %s1183_s7, %s1339_s8  ;;  %p1345_p4 = scmp.lt.s32.totalorder %s1339_s8, %s1339_s8 }
  0x2d   :  { %v174_v31 = vand.u32 4294901760, %v1440_v21 }
  0x2e   :  { %v185_v48 = vand.u32 4294901760, %v184_v38  ;;  %p1346_p5 = por %p1345_p4, %p1344_p3 }
  0x2f   :  { %v175_v43 = vsub.f32 %v1440_v21, %v174_v31 }
  0x30   :  { %1293 = vset.pattern.permute.xlu1 %v1374_v5  ;;  %1292 = vset.pattern.permute.xlu0 %v1374_v5  ;;  %v186_v60 = vsub.f32 %v184_v38, %v185_v48  ;;  %p1347_p6 = pnand %p1346_p5, %p1340_p2 }
  0x31   :  { %84 = vperm.xlu1 %1293, %v39_v3   ;;  %88 = vperm.xlu0 %1292, %v40_v2   ;;  %v176_v53 = vand.u32 4294901760, %v175_v43 }
  0x32   :  { %v187_v3 = vand.u32 4294901760, %v186_v60 }
  0x35   :  { %652 = vrot.lane.b32.xlu1 %v1427_v6, %s1375_s1  ;;  %1294 = vset.pattern.permute.xlu0 %v1376_v12 }
  0x36   :  { %649 = vperm.xlu0 %1294, %v1427_v6  }
  0xa7   :  { %v73_v16 = vpop.permute.xlu1 %72  ;;  %v61_v17 = vpop.permute.xlu0 %60 }
  0xa8   :  { %v65_v18 = vmul.f32 %v61_v17, %v46_v13  ;;  %v66_v19 = vmul.f32 %v61_v17, %v50_v14 }
  0xaa   :  { %v77_v22 = vadd.f32 %v73_v16, %v65_v18  ;;  %v78_v23 = vadd.f32 %v73_v16, %v66_v19 }
  0xab   :  { %v56_v24 = vpop.permute.xlu0 %55  ;;  %v69_v30 = vpop.permute.xlu1 %68 }
  0xac   :  { %v81_v26 = vmax.f32 %v77_v22, 0.0  ;;  %v82_v27 = vmax.f32 %v78_v23, 0.0  ;;  %v63_v28 = vmul.f32 %v56_v24, %v46_v13  ;;  %v64_v29 = vmul.f32 %v56_v24, %v50_v14 }
  0xae   :  { %v98_v32 = vsel %vm96_vm1, %v81_v26, 0  ;;  %v101_v33 = vsel %vm96_vm1, %v82_v27, 0  ;;  %v75_v34 = vadd.f32 %v69_v30, %v63_v28  ;;  %v76_v35 = vadd.f32 %v69_v30, %v64_v29 }
  0xaf   :  { %v107_v36 = vand.u32 4294901760, %v101_v33  ;;  %v109_v37 = vand.u32 4294901760, %v98_v32 }
  0xb0   :  { %v79_v39 = vmax.f32 %v75_v34, 0.0  ;;  %v80_v40 = vmax.f32 %v76_v35, 0.0  ;;  %v85_v18 = vpop.permute.xlu1 %84  ;;  %v89_v23 = vpop.permute.xlu0 %88 }
  0xb1   :  { %v207_v41 = vsub.f32 %v101_v33, %v107_v36  ;;  %v213_v42 = vsub.f32 %v98_v32, %v109_v37 }
  0xb2   :  { %v103_v44 = vand.u32 4294901760, %v80_v40  ;;  %v105_v45 = vand.u32 4294901760, %v79_v39 }
  0xb3   :  { %v208_v46 = vand.u32 4294901760, %v207_v41  ;;  %v214_v47 = vand.u32 4294901760, %v213_v42 }
  0xb4   :  { %v1192_v49 = vpack.c.bf16 %v107_v36, %v103_v44  ;;  %v195_v50 = vsub.f32 %v80_v40, %v103_v44  ;;  %v1194_v51 = vpack.c.bf16 %v109_v37, %v105_v45  ;;  %v201_v52 = vsub.f32 %v79_v39, %v105_v45  ;;  %v653_v19 = vpop.permute.xlu1 %652 }
  0xb5   :  { %v209_v55 = vsub.f32 %v207_v41, %v208_v46  ;;  %v215_v57 = vsub.f32 %v213_v42, %v214_v47  ;;  %v654_v20 = vsel %vm91_vm0, %v653_v19, 0 }
  0xb6   :  { %1193 = vmatprep.subr.bf16.mxu1 %v1192_v49  ;;  %v196_v54 = vand.u32 4294901760, %v195_v50  ;;  %v202_v56 = vand.u32 4294901760, %v201_v52  ;;  %v1200_v5 = vpack.c.bf16 %v207_v41, %v195_v50  ;;  %v1202_v9 = vpack.c.bf16 %v213_v42, %v201_v52 }
  0xb7   :  { %1195 = vmatpush1.bf16.msra.mxu1 %v1194_v51  ;;  %v210_v62 = vand.u32 4294901760, %v209_v55  ;;  %v216_v0 = vand.u32 4294901760, %v215_v57  ;;  %v1473_v27 = vand.u32 4294901760, %v654_v20 }
  0xb8   :  { %v197_v58 = vsub.f32 %v195_v50, %v196_v54  ;;  %v203_v59 = vsub.f32 %v201_v52, %v202_v56  ;;  %v1208_v10 = vpack.c.bf16 %v208_v46, %v196_v54  ;;  %v1210_v11 = vpack.c.bf16 %v214_v47, %v202_v56 }
  0xb9   :  { %v732_v35 = vsub.f32 %v654_v20, %v1473_v27 }
  0xba   :  { %v198_v61 = vand.u32 4294901760, %v197_v58  ;;  %177 = vmatmul.mubr.f32.vlgmr.msra.gmra.mrb[0].mxu1 %v176_v53  ;;  %v204_v63 = vand.u32 4294901760, %v203_v59 }
  0xbb   :  { %182 = vmatprep.mubr.f32.mxu1 %v1373_v4  ;;  %v733_v43 = vand.u32 4294901760, %v732_v35 }
  0xbc   :  { %v1196_v1 = vpack.c.bf16 %v210_v62, %v198_v61  ;;  %v1198_v2 = vpack.c.bf16 %v216_v0, %v204_v63 }
  0xbd   :  { %v734_v52 = vsub.f32 %v732_v35, %v733_v43 }
  0xbe   :  { %1197 = vmatprep.subr.bf16.mxu0 %v1196_v1  ;;  %1240 = vmatprep.subr.bf16.mxu1 %v1196_v1 }
  0xbf   :  { %1199 = vmatpush1.bf16.msra.mxu0 %v1198_v2  ;;  %1241 = vmatpush1.bf16.msra.mxu1 %v1198_v2  ;;  %v735_v62 = vand.u32 4294901760, %v734_v52 }
  0xc0   :  { %1201 = vmatprep.subr.bf16.mxu0 %v1200_v5  ;;  %188 = vmatmul.mubr.f32.gmra.mrb[2].mxu1 %v187_v3 }
  0xc1   :  { %285 = vmatprep.mubr.f32.mxu1 %v1373_v4 }
  0xc2   :  { %280 = vmatmul.mubr.f32.vlgmr.msra.gmra.mrb[0].mxu0 %v1436_v15 }
  0xc3   :  { %1203 = vmatpush1.bf16.msra.mxu0 %v1202_v9  ;;  %365 = vmatprep.mubr.f32.mxu0 %v1373_v4 }
  0xc4   :  { %1205 = vmatprep.subr.bf16.mxu0 %v1192_v49 }
  0xc8   :  { %287 = vmatmul.mubr.f32.vlgmr.msra.gmra.mrb[2].mxu1 %v1442_v25 }
  0xc9   :  { %730 = vmatprep.mubr.f32.mxu1 %v1373_v4 }
  0xca   :  { %368 = vmatmul.mubr.f32.vlgmr.msra.gmra.mrb[0].mxu0 %v1440_v21 }
  0xcb   :  { %1207 = vmatpush1.bf16.msra.mxu0 %v1194_v51  ;;  %373 = vmatprep.mubr.f32.mxu0 %v1373_v4 }
  0xcc   :  { %1209 = vmatprep.subr.bf16.mxu0 %v1208_v10 }
  0xce   :  { %376 = vmatmul.mubr.f32.gmra.mrb[2].mxu0 %v184_v38 }
  0xcf   :  { %450 = vmatprep.mubr.f32.mxu0 %v1373_v4 }
  0xd2   :  { %454 = vmatmul.mubr.f32.vlgmr.msra.gmra.mrb[0].mxu0 %v174_v31 }
  0xd3   :  { %1211 = vmatpush1.bf16.msra.mxu0 %v1210_v11  ;;  %459 = vmatprep.mubr.f32.mxu0 %v1373_v4  ;;  %v1377_v11 = vmov 1966171168  }
  0xd4   :  { %1213 = vmatprep.subr.bf16.mxu0 %v1192_v49  ;;  %v1157_v12 = vunpack.c.l.s4 %v1377_v11 }
  0xd6   :  { %463 = vmatmul.mubr.f32.gmra.mrb[2].mxu0 %v185_v48 }
  0xd7   :  { %545 = vmatprep.mubr.f32.mxu0 %v1373_v4 }
  0xda   :  { %547 = vmatmul.mubr.f32.vlgmr.msra.gmra.mrb[0].mxu0 %v1436_v15 }
  0xdb   :  { %1215 = vmatpush1.bf16.msra.mxu0 %v1194_v51  ;;  %552 = vmatprep.mubr.f32.mxu0 %v1373_v4 }
  0xde   :  { %554 = vmatmul.mubr.f32.gmra.mrb[2].mxu0 %v1442_v25 }
  0xdf   :  { %628 = vmatprep.mubr.f32.mxu0 %v1373_v4 }
  0xe2   :  { %630 = vmatmul.mubr.f32.vlgmr.msra.gmra.mrb[0].mxu0 %v1436_v15 }
  0xe3   :  { %635 = vmatprep.mubr.f32.mxu0 %v1373_v4 }
  0xe6   :  { %637 = vmatmul.mubr.f32.gmra.mrb[2].mxu0 %v1442_v25 }
 0x18d   :  { %v178_v13 = vpop.f32.mrb[0].mxu1 }
 0x18e   :  { %v180_v14 = vpop.f32.mrb[1].mxu1  ;;  %v179_v21 = vadd.f32 %v178_v13, %v85_v18  ;;  %v650_v13 = vpop.permute.xlu0 %649 }
 0x18f   :  { %v181_v22 = vadd.f32 %v180_v14, %v85_v18  ;;  %v1158_v14 = vunpack.c.0.s8 %v1157_v12 }
 0x191   :  { %v1161_v20 = vsub.s32 %v1158_v14, %v1431_v8 }
 0x19b   :  { %v288_v16 = vpop.f32.mrb[2].mxu1 }
 0x19c   :  { %v290_v17 = vpop.f32.mrb[3].mxu1  ;;  %v1246_v28 = vadd.f32 %v288_v16, %v89_v23 }
 0x19d   :  { %v1248_v6 = vadd.f32 %v290_v17, %v89_v23 }
 0x1b5   :  { %v631_v15 = vpop.f32.mrb[0].mxu0 }
 0x1b6   :  { %v1243_v24 = vadd.f32 %v631_v15, %v179_v21  ;;  %v633_v26 = vpop.f32.mrb[1].mxu0 }
 0x1b7   :  { %v1245_v25 = vadd.f32 %v633_v26, %v181_v22 }
 0x1b8   :  { %v643_v29 = vmax.f32 %v1243_v24, 0.0 }
 0x1b9   :  { %v644_v30 = vmax.f32 %v1245_v25, 0.0  ;;  %v638_v31 = vpop.f32.mrb[2].mxu0 }
 0x1ba   :  { %v664_v32 = vand.u32 4294901760, %v643_v29  ;;  %v1247_v33 = vadd.f32 %v1246_v28, %v638_v31  ;;  %v640_v34 = vpop.f32.mrb[3].mxu0 }
 0x1bb   :  { %v662_v36 = vand.u32 4294901760, %v644_v30  ;;  %v1249_v37 = vadd.f32 %v1248_v6, %v640_v34 }
 0x1bc   :  { %v749_v38 = vsub.f32 %v643_v29, %v664_v32  ;;  %v645_v39 = vmax.f32 %v1247_v33, 0.0 }
 0x1bd   :  { %v743_v40 = vsub.f32 %v644_v30, %v662_v36  ;;  %v646_v41 = vmax.f32 %v1249_v37, 0.0 }
 0x1be   :  { %v657_v42 = vsel %vm96_vm1, %v645_v39, 0  ;;  %v750_v44 = vand.u32 4294901760, %v749_v38 }
 0x1bf   :  { %v668_v45 = vand.u32 4294901760, %v657_v42  ;;  %v660_v46 = vsel %vm96_vm1, %v646_v41, 0  ;;  %v744_v47 = vand.u32 4294901760, %v743_v40 }
 0x1c0   :  { %v666_v48 = vand.u32 4294901760, %v660_v46  ;;  %v751_v54 = vsub.f32 %v749_v38, %v750_v44 }
 0x1c1   :  { %v1218_v49 = vpack.c.bf16 %v668_v45, %v664_v32  ;;  %v761_v50 = vsub.f32 %v657_v42, %v668_v45  ;;  %v745_v57 = vsub.f32 %v743_v40, %v744_v47 }
 0x1c2   :  { %v755_v51 = vsub.f32 %v660_v46, %v666_v48  ;;  %v1216_v53 = vpack.c.bf16 %v666_v48, %v662_v36  ;;  %v752_v1 = vand.u32 4294901760, %v751_v54 }
 0x1c3   :  { %v762_v55 = vand.u32 4294901760, %v761_v50  ;;  %v1226_v56 = vpack.c.bf16 %v761_v50, %v749_v38  ;;  %v746_v3 = vand.u32 4294901760, %v745_v57 }
 0x1c4   :  { %1217 = vmatprep.subr.bf16.mxu1 %v1216_v53  ;;  %v756_v58 = vand.u32 4294901760, %v755_v51  ;;  %v1224_v59 = vpack.c.bf16 %v755_v51, %v743_v40 }
 0x1c5   :  { %v763_v60 = vsub.f32 %v761_v50, %v762_v55  ;;  %1219 = vmatpush1.bf16.msra.mxu1 %v1218_v49  ;;  %v1234_v61 = vpack.c.bf16 %v762_v55, %v750_v44 }
 0x1c6   :  { %v757_v63 = vsub.f32 %v755_v51, %v756_v58  ;;  %v1232_v0 = vpack.c.bf16 %v756_v58, %v744_v47 }
 0x1c7   :  { %v764_v2 = vand.u32 4294901760, %v763_v60 }
 0x1c8   :  { %736 = vmatmul.mubr.f32.vlgmr.msra.gmra.mrb[4].mxu1 %v735_v62  ;;  %v758_v5 = vand.u32 4294901760, %v757_v63 }
 0x1c9   :  { %v1222_v9 = vpack.c.bf16 %v764_v2, %v752_v1  ;;  %826 = vmatprep.mubr.f32.mxu1 %v1373_v4 }
 0x1ca   :  { %v1220_v10 = vpack.c.bf16 %v758_v5, %v746_v3 }
 0x1cc   :  { %1221 = vmatprep.subr.bf16.mxu1 %v1220_v10 }
 0x1cd   :  { %1223 = vmatpush1.bf16.msra.mxu1 %v1222_v9 }
 0x1ce   :  { %1225 = vmatprep.subr.bf16.mxu1 %v1224_v59 }
 0x1d0   :  { %828 = vmatmul.mubr.f32.vlgmr.msra.gmra.mrb[4].mxu1 %v1473_v27 }
 0x1d1   :  { %1227 = vmatpush1.bf16.msra.mxu1 %v1226_v56  ;;  %906 = vmatprep.mubr.f32.mxu1 %v1373_v4 }
 0x1d2   :  { %1229 = vmatprep.subr.bf16.mxu1 %v1216_v53 }
 0x1d8   :  { %909 = vmatmul.mubr.f32.vlgmr.msra.gmra.mrb[4].mxu1 %v732_v35 }
 0x1d9   :  { %1231 = vmatpush1.bf16.msra.mxu1 %v1218_v49  ;;  %983 = vmatprep.mubr.f32.mxu1 %v1373_v4 }
 0x1da   :  { %1233 = vmatprep.subr.bf16.mxu1 %v1232_v0 }
 0x1e0   :  { %987 = vmatmul.mubr.f32.vlgmr.msra.gmra.mrb[4].mxu1 %v733_v43 }
 0x1e1   :  { %1235 = vmatpush1.bf16.msra.mxu1 %v1234_v61  ;;  %1069 = vmatprep.mubr.f32.mxu1 %v1373_v4 }
 0x1e2   :  { %1237 = vmatprep.subr.bf16.mxu1 %v1216_v53 }
 0x1e8   :  { %1071 = vmatmul.mubr.f32.vlgmr.msra.gmra.mrb[4].mxu1 %v1473_v27 }
 0x1e9   :  { %1239 = vmatpush1.bf16.msra.mxu1 %v1218_v49  ;;  %1145 = vmatprep.mubr.f32.mxu1 %v1373_v4 }
 0x1f0   :  { %1147 = vmatmul.mubr.f32.vlgmr.msra.gmra.mrb[4].mxu1 %v1473_v27 }
 0x2c3   :  { %v1148_v16 = vpop.f32.mrb[4].mxu1 }
 0x2c4   :  { %v1250_v17 = vadd.f32 %v1148_v16, %v650_v13  ;;  %v1150_v18 = vpop.f32.mrb[5].mxu1 }
 0x2c5   :  { %v1251_v19 = vadd.f32 %v1150_v18, %v650_v13 }
 0x2c7   :  { %v1155_v21 = vcombine.low %v1250_v17, %v1251_v19 }
 0x2c9   :  { %v1162_v22 = vrot.slane %v1155_v21, %v1161_v20 }
 0x2cb   :  { %v1169_v23 = vrot.slane %v1162_v22, %v1161_v20 }
 0x2cd   :  { %1175 = vst.msk [vmem:[#allocation7] sm:$0x3] %vm1173_vm2, %v1169_v23 }
 0x2ce   :  { %1350 = shalt.err (!%p1347_p6)
}
 0x2cf   :  { %s1351_s11 = scalar_lea.hbm %s1502_s2, 32 }
 0x2d0   :  { %p1352_p7 = scmp.ne.s32.totalorder %s1502_s2, %s1351_s11  ;;  %p1355_p8 = scmp.lt.u32.totalorder %s1351_s11, %s1502_s2 }
 0x2d2   :  { %p1357_p9 = pnand %p1355_p8, %p1352_p7 }
 0x2d4   :  { %1360 = shalt.err (!%p1357_p9)
}
 0x2d5   :  { %1185 = dma.vmem_to_hbm [thread:$0]  %s1183_s7, 32, %s1502_s2, [#allocation4]  }
 0x2d6   :  { %1365 = dma.done.wait [#allocation4], 32  }
 0x2d7   :  { %1366 = vsyncadd [#allocation4], 4294967264 }
 0x2d8   :  { %1189 = vsyncpa [#allocation3], 1 }
 0x2d9   :  { %1190 = vsyncpa [#allocation6], 1 }
 0x2da   :  { %1191 = vsyncpa [#allocation4], 1 }

</bundles_post_ra>
